<compile_context>
chip_gen: v5e
topology: v5e:2x2
jax: 0.10.0
libtpu: 0.0.40
codegen_flags: <defaults>
</compile_context>

<pallas_src>
import functools

import jax
import jax.numpy as jnp
from jax.experimental import pallas as pl
from jax.experimental.pallas import tpu as pltpu

IN_DIM = 381
HID_DIM = 50
OUT_DIM = 2

PACK_DIM = 128    # single lane-dense output block: emb in [0,50), out in [64,66)
OUT_COL = 64      # lane offset where the 2 fc2 outputs are packed

TILE_B_MAX = 2048  # large batch tile; multiple of 8


def _round_up(n, m):
    return ((n + m - 1) // m) * m


def _choose_tiling(B):
    """Pick (tile_b, grid, B_pad): tile_b multiple of 8, >=2 grid steps when
    possible (v7x has 2 TensorCores), minimal tail waste."""
    b8 = _round_up(B, 8)
    num_tiles = max(1, pl.cdiv(b8, TILE_B_MAX))
    if num_tiles == 1 and b8 >= 16:
        num_tiles = 2                       # ensure both TCs get work on v7x
    tile_b = _round_up(pl.cdiv(b8, num_tiles), 8)
    b_pad = _round_up(b8, tile_b)
    return tile_b, b_pad // tile_b, b_pad


def mlp_kernel(x_ref, w1_ref, b1_ref, w2_ref, b2_ref, packed_ref):
    # fc1: embedding = x @ W1 + b1. Cast to bf16 in-kernel (cheap VPU work,
    # hidden under DMA); accumulate in f32 on the MXU. K = 381 handled by
    # Mosaic's internal padding.
    x = x_ref[...].astype(jnp.bfloat16)                        # (tile_b, 381)
    emb = jnp.dot(x, w1_ref[...],
                  preferred_element_type=jnp.float32) + b1_ref[...]
    # ReLU on the f32 accumulator (no bf16 VPU needed -> safe on v5e).
    h = jnp.maximum(emb, 0.0)
    # fc2 in f32 (tiny matmul, hidden under DMA); w2/b2 are padded so that the
    # result is nonzero only in lanes [OUT_COL, OUT_COL+2).
    out = jnp.dot(h, w2_ref[...],
                  preferred_element_type=jnp.float32) + b2_ref[...]
    # Exact pack: emb lanes >= HID_DIM are exactly 0 (zero-padded w1/b1) and
    # out lanes outside [OUT_COL, OUT_COL+2) are exactly 0, so one add packs
    # both results into a single lane-dense (tile_b, 128) store.
    packed_ref[...] = emb + out


@functools.partial(jax.jit, static_argnames=())
def mlp_forward(x, w1, b1, w2, b2):
    """x: (B, 381) f32; w1: (381, 50); b1: (50,); w2: (50, 2); b2: (2,).
    Returns (out (B,2) f32, embedding (B,50) f32) — same semantics as the
    PyTorch module (embedding is pre-ReLU). fc1 runs in bf16 x bf16 -> f32."""
    B = x.shape[0]
    tile_b, num_tiles, B_pad = _choose_tiling(B)

    x = x.astype(jnp.float32)
    if B_pad != B:
        x_in = jnp.zeros((B_pad, IN_DIM), jnp.float32).at[:B, :].set(x)
    else:
        x_in = x  # no HBM round-trip when B already matches the tiling

    # Small resident operands (padded once; emb lanes 50:128 and out lanes
    # outside [OUT_COL, OUT_COL+2) stay exactly zero).
    w1_p = jnp.zeros((IN_DIM, PACK_DIM), jnp.bfloat16).at[:, :HID_DIM].set(
        w1.astype(jnp.bfloat16))
    b1_p = jnp.zeros((1, PACK_DIM), jnp.float32).at[0, :HID_DIM].set(
        b1.reshape(-1).astype(jnp.float32))
    w2_p = jnp.zeros((PACK_DIM, PACK_DIM), jnp.float32).at[
        :HID_DIM, OUT_COL:OUT_COL + OUT_DIM].set(w2.astype(jnp.float32))
    b2_p = jnp.zeros((1, PACK_DIM), jnp.float32).at[
        0, OUT_COL:OUT_COL + OUT_DIM].set(b2.reshape(-1).astype(jnp.float32))

    flops = 2 * B_pad * (IN_DIM * PACK_DIM + PACK_DIM * PACK_DIM)
    bytes_accessed = (x_in.size * 4 + w1_p.size * 2
                      + (b1_p.size + w2_p.size + b2_p.size) * 4
                      + B_pad * PACK_DIM * 4)

    packed = pl.pallas_call(
        mlp_kernel,
        out_shape=jax.ShapeDtypeStruct((B_pad, PACK_DIM), jnp.float32),
        grid=(num_tiles,),
        in_specs=[
            pl.BlockSpec((tile_b, IN_DIM), lambda i: (i, 0)),     # x: streamed
            pl.BlockSpec((IN_DIM, PACK_DIM), lambda i: (0, 0)),   # w1: resident
            pl.BlockSpec((1, PACK_DIM), lambda i: (0, 0)),        # b1: resident
            pl.BlockSpec((PACK_DIM, PACK_DIM), lambda i: (0, 0)), # w2: resident
            pl.BlockSpec((1, PACK_DIM), lambda i: (0, 0)),        # b2: resident
        ],
        out_specs=pl.BlockSpec((tile_b, PACK_DIM), lambda i: (i, 0)),
        compiler_params=pltpu.CompilerParams(
            dimension_semantics=("parallel",),        # shards across TCs on v7x
            vmem_limit_bytes=32 * 1024 * 1024),
        cost_estimate=pl.CostEstimate(
            flops=flops, transcendentals=0, bytes_accessed=bytes_accessed),
    )(x_in, w1_p, b1_p, w2_p, b2_p)

    # Unpack: embedding from lanes [0,50), out from lanes [OUT_COL, OUT_COL+2).
    embedding = packed[:B, :HID_DIM]
    out = packed[:B, OUT_COL:OUT_COL + OUT_DIM]
    return out, embedding


def init_params(key):
    """PyTorch Linear default init U[-1/sqrt(fan_in), 1/sqrt(fan_in)].
    Weights stored transposed: [fan_in, fan_out]."""
    k1, k2, k3, k4 = jax.random.split(key, 4)
    bnd1 = 1.0 / jnp.sqrt(jnp.float32(IN_DIM))
    bnd2 = 1.0 / jnp.sqrt(jnp.float32(HID_DIM))
    w1 = jax.random.uniform(k1, (IN_DIM, HID_DIM), jnp.float32, -bnd1, bnd1)
    b1 = jax.random.uniform(k2, (HID_DIM,), jnp.float32, -bnd1, bnd1)
    w2 = jax.random.uniform(k3, (HID_DIM, OUT_DIM), jnp.float32, -bnd2, bnd2)
    b2 = jax.random.uniform(k4, (OUT_DIM,), jnp.float32, -bnd2, bnd2)
    return w1, b1, w2, b2


if __name__ == "__main__":
    key = jax.random.PRNGKey(0)
    kx, kp = jax.random.split(key)
    w1, b1, w2, b2 = init_params(kp)

    # B=8 exercises the zero-copy (no batch pad) path; B=5 the padded path.
    for B in (8, 5):
        x = jax.random.normal(jax.random.fold_in(kx, B), (B, IN_DIM), jnp.float32)
        out, embedding = mlp_forward(x, w1, b1, w2, b2)
        jax.block_until_ready((out, embedding))
        assert out.shape == (B, OUT_DIM) and embedding.shape == (B, HID_DIM)

        # Reference matching the kernel's compute dtype (bf16 fc1, f32 accum).
        emb_ref_bf16 = jnp.dot(x.astype(jnp.bfloat16), w1.astype(jnp.bfloat16),
                               preferred_element_type=jnp.float32) + b1[None, :]
        out_ref_bf16 = jnp.maximum(emb_ref_bf16, 0.0) @ w2 + b2[None, :]
        assert jnp.allclose(embedding, emb_ref_bf16, atol=2e-3, rtol=2e-3)
        assert jnp.allclose(out, out_ref_bf16, atol=2e-3, rtol=2e-3)

        # Looser check against the pure-f32 PyTorch-equivalent forward.
        emb_ref_f32 = x @ w1 + b1[None, :]
        out_ref_f32 = jnp.maximum(emb_ref_f32, 0.0) @ w2 + b2[None, :]
        assert jnp.allclose(embedding, emb_ref_f32, atol=5e-2, rtol=5e-2)
        assert jnp.allclose(out, out_ref_f32, atol=5e-2, rtol=5e-2)

    print("KERNEL_OK")
</pallas_src>

<mosaic_0001>
module attributes {stable_mosaic.version = 11 : i64} {
  func.func @mlp_kernel(%arg0: i32, %arg1: memref<8x381xf32, #tpu.memory_space<vmem>>, %arg2: memref<381x128xbf16, #tpu.memory_space<vmem>>, %arg3: memref<1x128xf32, #tpu.memory_space<vmem>>, %arg4: memref<128x128xf32, #tpu.memory_space<vmem>>, %arg5: memref<1x128xf32, #tpu.memory_space<vmem>>, %arg6: memref<8x128xf32, #tpu.memory_space<vmem>>) attributes {dimension_semantics = [#tpu.dimension_semantics<parallel>], iteration_bounds = array<i64: 1>, scalar_prefetch = 0 : i64, scratch_operands = 0 : i64, tpu.core_type = #tpu.core_type<tc>, window_params = [{transform_indices = @transform_0, window_bounds = array<i64: 8, 381>}, {pipeline_mode = #tpu.pipeline_mode<synchronous>, transform_indices = @transform_1, window_bounds = array<i64: 381, 128>}, {pipeline_mode = #tpu.pipeline_mode<synchronous>, transform_indices = @transform_2, window_bounds = array<i64: 1, 128>}, {pipeline_mode = #tpu.pipeline_mode<synchronous>, transform_indices = @transform_3, window_bounds = array<i64: 128, 128>}, {pipeline_mode = #tpu.pipeline_mode<synchronous>, transform_indices = @transform_4, window_bounds = array<i64: 1, 128>}, {transform_indices = @transform_5, window_bounds = array<i64: 8, 128>}]} {
    %c0 = arith.constant 0 : index
    %c0_0 = arith.constant 0 : index
    %0 = vector.load %arg1[%c0, %c0_0] : memref<8x381xf32, #tpu.memory_space<vmem>>, vector<8x381xf32>
    %1 = arith.truncf %0 : vector<8x381xf32> to vector<8x381xbf16>
    %c0_1 = arith.constant 0 : index
    %c0_2 = arith.constant 0 : index
    %2 = vector.load %arg2[%c0_1, %c0_2] : memref<381x128xbf16, #tpu.memory_space<vmem>>, vector<381x128xbf16>
    %cst = arith.constant dense<0.000000e+00> : vector<8x128xf32>
    %3 = tpu.matmul %1, %2, %cst {dimension_numbers = #tpu.dot_dimension_numbers<[1], [0], [0], [1], [0, 0, 1, 1], [], []>} : vector<8x381xbf16>, vector<381x128xbf16>, vector<8x128xf32> -> vector<8x128xf32>
    %c0_3 = arith.constant 0 : index
    %c0_4 = arith.constant 0 : index
    %4 = vector.load %arg3[%c0_3, %c0_4] : memref<1x128xf32, #tpu.memory_space<vmem>>, vector<1x128xf32>
    %5 = vector.broadcast %4 : vector<1x128xf32> to vector<8x128xf32>
    %6 = arith.addf %3, %5 : vector<8x128xf32>
    %cst_5 = arith.constant 0.000000e+00 : f32
    %7 = vector.broadcast %cst_5 : f32 to vector<8x128xf32>
    %8 = arith.maximumf %6, %7 : vector<8x128xf32>
    %c0_6 = arith.constant 0 : index
    %c0_7 = arith.constant 0 : index
    %9 = vector.load %arg4[%c0_6, %c0_7] : memref<128x128xf32, #tpu.memory_space<vmem>>, vector<128x128xf32>
    %cst_8 = arith.constant dense<0.000000e+00> : vector<8x128xf32>
    %10 = tpu.matmul %8, %9, %cst_8 {dimension_numbers = #tpu.dot_dimension_numbers<[1], [0], [0], [1], [0, 0, 1, 1], [], []>} : vector<8x128xf32>, vector<128x128xf32>, vector<8x128xf32> -> vector<8x128xf32>
    %c0_9 = arith.constant 0 : index
    %c0_10 = arith.constant 0 : index
    %11 = vector.load %arg5[%c0_9, %c0_10] : memref<1x128xf32, #tpu.memory_space<vmem>>, vector<1x128xf32>
    %12 = vector.broadcast %11 : vector<1x128xf32> to vector<8x128xf32>
    %13 = arith.addf %10, %12 : vector<8x128xf32>
    %14 = arith.addf %6, %13 : vector<8x128xf32>
    %c0_11 = arith.constant 0 : index
    %c0_12 = arith.constant 0 : index
    %15 = vector.load %arg6[%c0_11, %c0_12] : memref<8x128xf32, #tpu.memory_space<vmem>>, vector<8x128xf32>
    tpu.vector_store %arg6[%c0_11, %c0_12], %14 {strides = array<i32>} : memref<8x128xf32, #tpu.memory_space<vmem>>, vector<8x128xf32>,
    return
  }
  func.func @transform_0(%arg0: i32) -> (i32, i32) {
    %c0_i32 = arith.constant 0 : i32
    %c0_i32_0 = arith.constant 0 : i32
    return %arg0, %c0_i32 : i32, i32
  }
  func.func @transform_1(%arg0: i32) -> (i32, i32) {
    %c0_i32 = arith.constant 0 : i32
    %c0_i32_0 = arith.constant 0 : i32
    %c0_i32_1 = arith.constant 0 : i32
    return %c0_i32, %c0_i32_0 : i32, i32
  }
  func.func @transform_2(%arg0: i32) -> (i32, i32) {
    %c0_i32 = arith.constant 0 : i32
    %c0_i32_0 = arith.constant 0 : i32
    %c0_i32_1 = arith.constant 0 : i32
    return %c0_i32, %c0_i32_0 : i32, i32
  }
  func.func @transform_3(%arg0: i32) -> (i32, i32) {
    %c0_i32 = arith.constant 0 : i32
    %c0_i32_0 = arith.constant 0 : i32
    %c0_i32_1 = arith.constant 0 : i32
    return %c0_i32, %c0_i32_0 : i32, i32
  }
  func.func @transform_4(%arg0: i32) -> (i32, i32) {
    %c0_i32 = arith.constant 0 : i32
    %c0_i32_0 = arith.constant 0 : i32
    %c0_i32_1 = arith.constant 0 : i32
    return %c0_i32, %c0_i32_0 : i32, i32
  }
  func.func @transform_5(%arg0: i32) -> (i32, i32) {
    %c0_i32 = arith.constant 0 : i32
    %c0_i32_0 = arith.constant 0 : i32
    return %arg0, %c0_i32 : i32, i32
  }
}

</mosaic_0001>

<bundles_post_ra>
// kernel: mlp_forward.1
= control target key start
LH: loop header
LB: loop body
LE: loop exit
PB: predicated region body
PF: predicated region fallthrough
CT: control target
= control target key end

     0   :  { %vm225_vm0 = vcmask 1045504   ;;  %vm226_vm1 = vcmask 1046528   ;;  %v442_v3 = vmov 65535   ;;  %vm221_vm2 = vcmask 1022976   ;;  %s614_s1 = inlined_call_operand.vmem [shape: bf16[381,128], index: 1, kind: input, shape index: {}]   ;;  %s615_s3 = inlined_call_operand.vmem [shape: f32[128,128], index: 3, kind: input, shape index: {}]   ;;  %s616_s2 = inlined_call_operand.vmem [shape: f32[1,128], index: 2, kind: input, shape index: {}]   ;;  %s617_s0 = inlined_call_operand.vmem [shape: f32[8,381], index: 0, kind: input, shape index: {}]   ;;  %s618_s4 = inlined_call_operand.vmem [shape: f32[1,128], index: 4, kind: input, shape index: {}]   ;;  %s619_s5 = inlined_call_operand.vmem [shape: f32[8,128], index: 5, kind: output, shape index: {}]  }
   0x1   :  { %v422_v0 = vld [vmem:[%s614_s1 + $0x38] sm:$0xff]  ;;  %v227_v4 = vsel %vm225_vm0, 4294967295, %v442_v3  ;;  %v421_v8 = vld [vmem:[%s614_s1 + $0x30] sm:$0xff]  ;;  %v420_v12 = vld [vmem:[%s614_s1 + $0x28] sm:$0xff] }
   0x2   :  { %v430_v1 = vld [vmem:[%s614_s1 + $0x78] sm:$0xff]  ;;  %v228_v6 = vsel %vm226_vm1, %v227_v4, 0  ;;  %232 = vmatpush.bf16.msra.mxu0 %v422_v0  ;;  %v429_v9 = vld [vmem:[%s614_s1 + $0x70] sm:$0xff]  ;;  %v428_v13 = vld [vmem:[%s614_s1 + $0x68] sm:$0xff] }
   0x3   :  { %v412_v2 = vld [vmem:[%s614_s1 + $0xb8] sm:$0xf]  ;;  %v438_v5 = vld [vmem:[%s614_s1 + $0xb8] sm:$0x70]  ;;  %245 = vmatpush.bf16.msra.mxu1 %v430_v1  ;;  %v437_v11 = vld [vmem:[%s614_s1 + $0xb0] sm:$0xff] }
   0x4   :  { %v413_v7 = vor.u32 %v438_v5, %v412_v2  ;;  %v287_v14 = vld [vmem:[%s615_s3 + $0x78] sm:$0xff]  ;;  %v436_v15 = vld [vmem:[%s614_s1 + $0xa8] sm:$0xff]  ;;  %v419_v16 = vld [vmem:[%s614_s1 + $0x20] sm:$0xff] }
   0x5   :  { %v286_v17 = vld [vmem:[%s615_s3 + $0x70] sm:$0xff]  ;;  %v427_v18 = vld [vmem:[%s614_s1 + $0x60] sm:$0xff]  ;;  %292 = vmatpush.msra.mxu3 %v287_v14  ;;  %v285_v19 = vld [vmem:[%s615_s3 + $0x68] sm:$0xff] }
   0x6   :  { %v230_v10 = vand.u32 %v413_v7, %v228_v6  ;;  %233 = vmatpush.bf16.msra.mxu0 %v421_v8  ;;  %v435_v20 = vld [vmem:[%s614_s1 + $0xa0] sm:$0xff]  ;;  %v418_v21 = vld [vmem:[%s614_s1 + $0x18] sm:$0xff]  ;;  %v417_v26 = vld [vmem:[%s614_s1 + $0x10] sm:$0xff] }
   0x7   :  { %246 = vmatpush.bf16.msra.mxu1 %v429_v9  ;;  %293 = vmatpush.msra.mxu3 %v286_v17  ;;  %v284_v22 = vld [vmem:[%s615_s3 + $0x60] sm:$0xff]  ;;  %v426_v23 = vld [vmem:[%s614_s1 + $0x58] sm:$0xff]  ;;  %v282_v27 = vld [vmem:[%s615_s3 + $0x50] sm:$0xff] }
   0x8   :  { %258 = vmatpush.bf16.msra.mxu2 %v230_v10  ;;  %v283_v24 = vld [vmem:[%s615_s3 + $0x58] sm:$0xff]  ;;  %v425_v28 = vld [vmem:[%s614_s1 + $0x50] sm:$0xff]  ;;  %v281_v29 = vld [vmem:[%s615_s3 + $0x48] sm:$0xff] }
   0x9   :  { %294 = vmatpush.msra.mxu3 %v285_v19  ;;  %v434_v25 = vld [vmem:[%s614_s1 + $0x98] sm:$0xff]  ;;  %v433_v30 = vld [vmem:[%s614_s1 + $0x90] sm:$0xff]  ;;  %v416_v31 = vld [vmem:[%s614_s1 + $0x8] sm:$0xff] }
   0xa   :  { %234 = vmatpush.bf16.msra.mxu0 %v420_v12  ;;  %v280_v32 = vld [vmem:[%s615_s3 + $0x40] sm:$0xff]  ;;  %v424_v33 = vld [vmem:[%s614_s1 + $0x48] sm:$0xff]  ;;  %v279_v34 = vld [vmem:[%s615_s3 + $0x38] sm:$0xff] }
   0xb   :  { %247 = vmatpush.bf16.msra.mxu1 %v428_v13  ;;  %295 = vmatpush.msra.mxu3 %v284_v22  ;;  %v432_v35 = vld [vmem:[%s614_s1 + $0x88] sm:$0xff]  ;;  %v415_v36 = vld [vmem:[%s614_s1] sm:$0xff]  ;;  %v22_v43 = vld [vmem:[%s617_s0 + $0x10] sm:$0xff] }
   0xc   :  { %259 = vmatpush.bf16.msra.mxu2 %v437_v11  ;;  %v20_v37 = vld [vmem:[%s617_s0] sm:$0xff]  ;;  %v21_v39 = vld [vmem:[%s617_s0 + $0x8] sm:$0xff]  ;;  %v25_v44 = vpack.c.bf16 %v22_v43, %v22_v43  ;;  %v278_v45 = vld [vmem:[%s615_s3 + $0x30] sm:$0xff] }
   0xd   :  { %296 = vmatpush.msra.mxu3 %v283_v24  ;;  %v423_v38 = vld [vmem:[%s614_s1 + $0x40] sm:$0xff]  ;;  %v23_v40 = vpack.c.bf16 %v20_v37, %v20_v37  ;;  %v24_v42 = vpack.c.bf16 %v21_v39, %v21_v39  ;;  %v277_v46 = vld [vmem:[%s615_s3 + $0x28] sm:$0xff]  ;;  %v275_v48 = vld [vmem:[%s615_s3 + $0x18] sm:$0xff] }
   0xe   :  { %235 = vmatpush.bf16.msra.mxu0 %v419_v16  ;;  %v431_v41 = vld [vmem:[%s614_s1 + $0x80] sm:$0xff]  ;;  %v274_v49 = vld [vmem:[%s615_s3 + $0x10] sm:$0xff]  ;;  %v273_v50 = vld [vmem:[%s615_s3 + $0x8] sm:$0xff] }
   0xf   :  { %248 = vmatpush.bf16.msra.mxu1 %v427_v18  ;;  %297 = vmatpush.msra.mxu3 %v282_v27  ;;  %v276_v47 = vld [vmem:[%s615_s3 + $0x20] sm:$0xff] }
  0x10   :  { %260 = vmatpush.bf16.msra.mxu2 %v436_v15  ;;  %v272_v51 = vld [vmem:[%s615_s3] sm:$0xff] }
  0x11   :  { %298 = vmatpush.msra.mxu3 %v281_v29  ;;  %v440_v52 = vld [vmem:[%s616_s2] ss:$0 sm:$0xff] }
  0x12   :  { %236 = vmatpush.bf16.msra.mxu0 %v418_v21  ;;  %v441_v63 = vld [vmem:[%s618_s4] ss:$0 sm:$0xff] }
  0x13   :  { %249 = vmatpush.bf16.msra.mxu1 %v426_v23  ;;  %299 = vmatpush.msra.mxu3 %v280_v32 }
  0x14   :  { %261 = vmatpush.bf16.msra.mxu2 %v435_v20 }
  0x15   :  { %300 = vmatpush.msra.mxu3 %v279_v34 }
  0x16   :  { %237 = vmatpush.bf16.msra.mxu0 %v417_v26 }
  0x17   :  { %250 = vmatpush.bf16.msra.mxu1 %v425_v28  ;;  %301 = vmatpush.msra.mxu3 %v278_v45 }
  0x18   :  { %262 = vmatpush.bf16.msra.mxu2 %v434_v25 }
  0x19   :  { %302 = vmatpush.msra.mxu3 %v277_v46 }
  0x1a   :  { %238 = vmatpush.bf16.msra.mxu0 %v416_v31 }
  0x1b   :  { %251 = vmatpush.bf16.msra.mxu1 %v424_v33  ;;  %303 = vmatpush.msra.mxu3 %v276_v47 }
  0x1c   :  { %263 = vmatpush.bf16.msra.mxu2 %v433_v30 }
  0x1d   :  { %304 = vmatpush.msra.mxu3 %v275_v48 }
  0x1e   :  { %239 = vmatpush.bf16.msra.mxu0 %v415_v36 }
  0x1f   :  { %252 = vmatpush.bf16.msra.mxu1 %v423_v38  ;;  %305 = vmatpush.msra.mxu3 %v274_v49 }
  0x20   :  { %264 = vmatpush.bf16.msra.mxu2 %v432_v35 }
  0x21   :  { %240 = vmatmul.bf16.vlgmr.msra.gmra.mxu0 %v23_v40  ;;  %306 = vmatpush.msra.mxu3 %v273_v50 }
  0x22   :  { %253 = vmatmul.bf16.vlgmr.msra.gmra.mxu1 %v24_v42 }
  0x23   :  { %307 = vmatpush.msra.mxu3 %v272_v51 }
  0x24   :  { %265 = vmatpush.bf16.msra.mxu2 %v431_v41 }
  0x27   :  { %414 = vmatmul.msk.bf16.vlgmr.msra.gmra.mxu2 %vm221_vm2, %v25_v44 }
  0x9e   :  { %v241_v53 = vpop.f32.mrf.mxu0 }
  0x9f   :  { %v254_v54 = vpop.f32.mrf.mxu1  ;;  %v242_v55 = vadd.f32 %v440_v52, %v241_v53 }
  0xa1   :  { %v255_v56 = vadd.f32 %v254_v54, %v242_v55 }
  0xa6   :  { %v243_v57 = vpop.f32.mrf.mxu0 }
  0xa7   :  { %v256_v58 = vpop.f32.mrf.mxu1 }
  0xaa   :  { %v267_v59 = vpop.f32.mrf.mxu2 }
  0xab   :  { %v268_v60 = vadd.f32 %v267_v59, %v255_v56 }
  0xad   :  { %v271_v61 = vmax.f32 %v268_v60, 0.0 }
  0xaf   :  { %308 = vmatmul.f32.vlgmr.msra.gmra.mxu3 %v271_v61 }
  0xb2   :  { %v269_v62 = vpop.f32.mrf.mxu2 }
 0x132   :  { %v309_v0 = vpop.f32.mrf.mxu3 }
 0x133   :  { %v310_v1 = vadd.f32 %v441_v63, %v309_v0 }
 0x135   :  { %v312_v2 = vadd.f32 %v310_v1, %v268_v60 }
 0x137   :  { %313 = vst [vmem:[%s619_s5] sm:$0xff] %v312_v2 }

</bundles_post_ra>
